<compile_context>
chip_gen: v7x
topology: tpu7x:2x2x1
jax: 0.10.0
libtpu: 0.0.40
codegen_flags: <defaults>
</compile_context>

<pallas_src>
import functools

import jax
import jax.numpy as jnp
from jax import lax
from jax.experimental import pallas as pl
from jax.experimental.pallas import tpu as pltpu

_LANE = 128


def _round_up(x, m):
    return ((x + m - 1) // m) * m


def _fused_conv_kernel(n_taps, strip_h, Wo_p, x_ref, wf_ref, b_ref, o_ref):
    """One (image, output-row-strip) grid step of the fused conv.

    x_ref : (H_fold, Wo_p, C_fold)    bf16 per-image block; width taps already
                                      folded into the channel (lane) dim
    wf_ref: (n_taps, C_fold, Cout_p)  bf16 fused weights (1x1 convs + masks folded)
    b_ref : (1, Cout_p)               f32 bias (zero-padded)
    o_ref : (strip_h, Wo_p, Cout_p)   f32 lane-dense output strip (Cout_p % 128 == 0)
    """
    C_fold = x_ref.shape[-1]
    Cout_p = o_ref.shape[-1]
    M = strip_h * Wo_p

    row0 = pl.program_id(1) * strip_h
    if strip_h & (strip_h - 1) == 0:           # alignment hint when it holds
        row0 = pl.multiple_of(row0, strip_h)

    acc = None
    for t in range(n_taps):
        # Slice along the leading (untiled) dim of the resident block: no
        # relayout copy.  Each tap is one MXU matmul with a K*Cin-deep
        # (or K*K*Cin-deep) contraction; bf16 operands, f32 accumulation.
        rows = x_ref[pl.ds(row0 + t, strip_h), :, :]          # (strip_h, Wo_p, C_fold)
        part = jnp.dot(rows.reshape(M, C_fold), wf_ref[t],
                       preferred_element_type=jnp.float32)
        acc = part if acc is None else acc + part

    out = acc + b_ref[...]                                     # (1, Cout_p) broadcast
    o_ref[...] = out.reshape(strip_h, Wo_p, Cout_p).astype(o_ref.dtype)


def decomposed_conv_forward(x_nchw, first_w, mask1, core_w, mask2, last_w,
                            bias, *, stride=1, padding=1, strip_h=None):
    """Forward of decomposed_conv. x_nchw: (N, Cin, H, W) -> (N, Cout, Ho, Wo)."""
    N, Cin, H, W = x_nchw.shape
    C2, C1, K, _ = core_w.shape
    Cout = last_w.shape[0]
    Ho = (H + 2 * padding - K) // stride + 1
    Wo = (W + 2 * padding - K) // stride + 1

    # ---- Fold first 1x1 conv, mask1, mask2 and last 1x1 conv into the core
    #      KxK weights (all stages are linear, so this is exact in f32).
    W1 = jnp.transpose(first_w[:, :, 0, 0]).astype(jnp.float32)     # (Cin, C1)
    Wc = jnp.transpose(core_w, (2, 3, 1, 0)).astype(jnp.float32)    # (K, K, C1, C2)
    W3 = jnp.transpose(last_w[:, :, 0, 0]).astype(jnp.float32)      # (C2, Cout)
    m1 = mask1.reshape(-1).astype(jnp.float32)                      # (C1,)
    m2 = mask2.reshape(-1).astype(jnp.float32)                      # (C2,)
    Wc_m = Wc * m1[None, None, :, None] * m2[None, None, None, :]
    wf = jnp.einsum('ia,xyao,oc->xyic', W1, Wc_m, W3)               # (K, K, Cin, Cout)
    b = bias if bias is not None else jnp.zeros((Cout,), jnp.float32)
    b = b.astype(jnp.float32)

    # ---- Tiling choices.
    Cout_p = _round_up(Cout, _LANE)   # lane-dense unmasked output stores
    Wo_p = _round_up(Wo, 16)          # bf16 sublane tile -> in-kernel reshapes are views

    if strip_h is None:
        strip_h = max(1, min(Ho, 512 // max(Wo_p, 1)))   # target M ~= 512 rows
    strip_h = max(1, min(strip_h, Ho))
    n_strips = -(-Ho // strip_h)
    if N * n_strips < 2 and Ho > 1:    # keep both v7x TensorCores busy
        n_strips = 2
    strip_h = -(-Ho // n_strips)       # even out the strips
    n_strips = -(-Ho // strip_h)
    Ho_p = strip_h * n_strips

    # ---- Build the tap-folded, zero-padded, NHWC bf16 input.
    # TODO(synk): for large images fuse this transpose/pad/fold HBM copy (and
    # the output slice+transpose below) into the kernel via manual per-strip
    # halo DMA instead of a whole-image-resident block (critical on v7x 64 MiB).
    x = jnp.transpose(x_nchw, (0, 2, 3, 1)).astype(jnp.float32)      # NHWC
    if stride == 1:
        # Fold only the kw taps: x_fold[n, h, w, kw*Cin + i] = x_pad[n, h, w+kw, i]
        H_fold = Ho_p + K - 1
        W_need = Wo_p + K - 1
        x_pad = jnp.pad(x, ((0, 0),
                            (padding, max(0, H_fold - H - padding)),
                            (padding, max(0, W_need - W - padding)),
                            (0, 0)))[:, :H_fold, :W_need, :]
        x_fold = jnp.concatenate(
            [x_pad[:, :, kw:kw + Wo_p, :] for kw in range(K)], axis=-1)
        wf_fold = wf.reshape(K, K * Cin, Cout)                        # per-kh weights
        n_taps = K
    else:
        # stride > 1: fold all K*K taps (full im2col) so the kernel needs no
        # strided reads at all; the stride is absorbed by the wrapper slicing.
        Hp = (Ho_p - 1) * stride + K
        Wp = (Wo_p - 1) * stride + K
        x_pad = jnp.pad(x, ((0, 0),
                            (padding, max(0, Hp - H - padding)),
                            (padding, max(0, Wp - W - padding)),
                            (0, 0)))[:, :Hp, :Wp, :]
        patches = [x_pad[:, kh:kh + (Ho_p - 1) * stride + 1:stride,
                            kw:kw + (Wo_p - 1) * stride + 1:stride, :]
                   for kh in range(K) for kw in range(K)]
        x_fold = jnp.concatenate(patches, axis=-1)                    # (N, Ho_p, Wo_p, K*K*Cin)
        wf_fold = wf.reshape(1, K * K * Cin, Cout)
        n_taps = 1
    # TODO(synk): when Cin >= 128 the contraction is already full; skip the
    # kw-fold there to avoid the K x HBM read amplification of the input.

    x_fold = x_fold.astype(jnp.bfloat16)                              # bf16 MXU operand
    C_fold = wf_fold.shape[1]
    H_in = x_fold.shape[1]
    wf_p = jnp.pad(wf_fold, ((0, 0), (0, 0), (0, Cout_p - Cout))).astype(jnp.bfloat16)
    b_p = jnp.pad(b, (0, Cout_p - Cout)).reshape(1, Cout_p)

    # ---- VMEM budget: double-buffered blocks + accumulator + slack.
    x_blk = H_in * Wo_p * _round_up(C_fold, _LANE) * 2                # lane-padded bf16
    wf_blk = n_taps * _round_up(C_fold, 16) * Cout_p * 2
    o_blk = strip_h * Wo_p * Cout_p * 4
    est = 2 * (x_blk + wf_blk + o_blk) + o_blk + (1 << 20)
    vmem_limit = int(min(max(32 * 1024 * 1024, 2 * est), 128 * 1024 * 1024))

    kernel = functools.partial(_fused_conv_kernel, n_taps, strip_h, Wo_p)
    out_p = pl.pallas_call(
        kernel,
        out_shape=jax.ShapeDtypeStruct((N, Ho_p, Wo_p, Cout_p), jnp.float32),
        grid=(N, n_strips),
        in_specs=[
            # Whole folded image per batch element; block index constant along
            # the strip axis -> DMA'd once per image, resident across strips.
            pl.BlockSpec((None, H_in, Wo_p, C_fold), lambda n, r: (n, 0, 0, 0)),
            pl.BlockSpec((n_taps, C_fold, Cout_p), lambda n, r: (0, 0, 0)),
            pl.BlockSpec((1, Cout_p), lambda n, r: (0, 0)),
        ],
        out_specs=pl.BlockSpec((None, strip_h, Wo_p, Cout_p),
                               lambda n, r: (n, r, 0, 0)),
        compiler_params=pltpu.CompilerParams(
            dimension_semantics=("parallel", "parallel"),
            vmem_limit_bytes=vmem_limit),
    )(x_fold, wf_p, b_p)

    # Drop alignment padding and return NCHW f32 to match the PyTorch module.
    # TODO(synk): emit the consumer's layout/dtype directly from the kernel to
    # avoid this extra HBM slice+transpose for mem-bound shapes.
    out = out_p[:, :Ho, :Wo, :Cout]
    return jnp.transpose(out, (0, 3, 1, 2))


def _reference(x, first_w, mask1, core_w, mask2, last_w, bias, stride, padding):
    """Pure-JAX NCHW reference mirroring the PyTorch forward stage by stage."""
    dn = ('NCHW', 'OIHW', 'NCHW')
    out = lax.conv_general_dilated(x, first_w, (1, 1), 'VALID',
                                   dimension_numbers=dn)
    out = out * mask1.reshape(1, -1, 1, 1)
    out = lax.conv_general_dilated(out, core_w, (stride, stride),
                                   [(padding, padding), (padding, padding)],
                                   dimension_numbers=dn)
    out = out * mask2.reshape(1, -1, 1, 1)
    out = lax.conv_general_dilated(out, last_w, (1, 1), 'VALID',
                                   dimension_numbers=dn)
    if bias is not None:
        out = out + bias.reshape(1, -1, 1, 1)
    return out


if __name__ == "__main__":
    # Shapes consistent with the module: original Conv2d(Cin=4, Cout=8, k=3,
    # stride=1, padding=1, bias=True) decomposed into identity 1x1 / core 3x3 /
    # identity 1x1 with per-channel masks.
    N, Cin, H, W = 2, 4, 16, 16
    Cout, K = 8, 3

    key = jax.random.PRNGKey(0)
    k_x, k_w, k_b = jax.random.split(key, 3)
    x = jax.random.normal(k_x, (N, Cin, H, W), jnp.float32)
    core_w = 0.1 * jax.random.normal(k_w, (Cout, Cin, K, K), jnp.float32)
    bias = jax.random.normal(k_b, (Cout,), jnp.float32)

    # decomposed_conv.__init__ from an nn.Conv2d: first/last are identity 1x1s.
    first_w = jnp.eye(Cin, dtype=jnp.float32).reshape(Cin, Cin, 1, 1)
    last_w = jnp.eye(Cout, dtype=jnp.float32).reshape(Cout, Cout, 1, 1)
    # Masks default to ones; zero one channel in each to exercise the mask path.
    mask1 = jnp.ones((Cin,), jnp.float32).at[-1].set(0.0)
    mask2 = jnp.ones((Cout,), jnp.float32).at[-1].set(0.0)

    for stride, padding in ((1, 1), (2, 1)):
        out = decomposed_conv_forward(x, first_w, mask1, core_w, mask2, last_w,
                                      bias, stride=stride, padding=padding)
        out = jax.block_until_ready(out)
        ref = _reference(x, first_w, mask1, core_w, mask2, last_w, bias,
                         stride, padding)
        assert out.shape == ref.shape, (out.shape, ref.shape)
        # bf16 MXU operands (f32 accumulation) -> tolerance loosened vs pure f32.
        max_err = float(jnp.max(jnp.abs(out - ref)))
        assert max_err < 5e-2, f"stride={stride}: max abs error {max_err}"
    print("KERNEL_OK")
</pallas_src>

<mosaic_0001>
module attributes {stable_mosaic.version = 11 : i64} {
  func.func @_fused_conv_kernel(%arg0: i32, %arg1: i32, %arg2: memref<1x18x16x12xbf16, #tpu.memory_space<vmem>>, %arg3: memref<3x12x128xbf16, #tpu.memory_space<vmem>>, %arg4: memref<1x128xf32, #tpu.memory_space<vmem>>, %arg5: memref<1x16x16x128xf32, #tpu.memory_space<vmem>>) attributes {dimension_semantics = [#tpu.dimension_semantics<parallel>, #tpu.dimension_semantics<parallel>], iteration_bounds = array<i64: 2, 1>, scalar_prefetch = 0 : i64, scratch_operands = 0 : i64, tpu.core_type = #tpu.core_type<tc>, window_params = [{transform_indices = @transform_0, window_bounds = array<i64: 1, 18, 16, 12>}, {pipeline_mode = #tpu.pipeline_mode<synchronous>, transform_indices = @transform_1, window_bounds = array<i64: 3, 12, 128>}, {pipeline_mode = #tpu.pipeline_mode<synchronous>, transform_indices = @transform_2, window_bounds = array<i64: 1, 128>}, {transform_indices = @transform_3, window_bounds = array<i64: 1, 16, 16, 128>}]} {
    %c16_i32 = arith.constant 16 : i32
    %0 = arith.muli %arg1, %c16_i32 : i32
    %1 = tpu.assume_multiple %0, 16 : i32
    %c0_i32 = arith.constant 0 : i32
    %2 = arith.addi %1, %c0_i32 : i32
    %c0 = arith.constant 0 : index
    %3 = arith.index_cast %2 : i32 to index
    %c0_0 = arith.constant 0 : index
    %c0_1 = arith.constant 0 : index
    %4 = vector.load %arg2[%c0, %3, %c0_0, %c0_1] : memref<1x18x16x12xbf16, #tpu.memory_space<vmem>>, vector<1x16x16x12xbf16>
    %5 = vector.shape_cast %4 : vector<1x16x16x12xbf16> to vector<16x16x12xbf16>
    %6 = vector.shape_cast %5 : vector<16x16x12xbf16> to vector<256x12xbf16>
    %c0_2 = arith.constant 0 : index
    %c0_3 = arith.constant 0 : index
    %c0_4 = arith.constant 0 : index
    %7 = vector.load %arg3[%c0_2, %c0_3, %c0_4] : memref<3x12x128xbf16, #tpu.memory_space<vmem>>, vector<1x12x128xbf16>
    %8 = vector.shape_cast %7 : vector<1x12x128xbf16> to vector<12x128xbf16>
    %cst = arith.constant dense<0.000000e+00> : vector<256x128xf32>
    %9 = tpu.matmul %6, %8, %cst {dimension_numbers = #tpu.dot_dimension_numbers<[1], [0], [0], [1], [0, 0, 1, 1], [], []>} : vector<256x12xbf16>, vector<12x128xbf16>, vector<256x128xf32> -> vector<256x128xf32>
    %c1_i32 = arith.constant 1 : i32
    %10 = arith.addi %1, %c1_i32 : i32
    %c0_5 = arith.constant 0 : index
    %11 = arith.index_cast %10 : i32 to index
    %c0_6 = arith.constant 0 : index
    %c0_7 = arith.constant 0 : index
    %12 = vector.load %arg2[%c0_5, %11, %c0_6, %c0_7] : memref<1x18x16x12xbf16, #tpu.memory_space<vmem>>, vector<1x16x16x12xbf16>
    %13 = vector.shape_cast %12 : vector<1x16x16x12xbf16> to vector<16x16x12xbf16>
    %14 = vector.shape_cast %13 : vector<16x16x12xbf16> to vector<256x12xbf16>
    %c1 = arith.constant 1 : index
    %c0_8 = arith.constant 0 : index
    %c0_9 = arith.constant 0 : index
    %15 = vector.load %arg3[%c1, %c0_8, %c0_9] : memref<3x12x128xbf16, #tpu.memory_space<vmem>>, vector<1x12x128xbf16>
    %16 = vector.shape_cast %15 : vector<1x12x128xbf16> to vector<12x128xbf16>
    %cst_10 = arith.constant dense<0.000000e+00> : vector<256x128xf32>
    %17 = tpu.matmul %14, %16, %cst_10 {dimension_numbers = #tpu.dot_dimension_numbers<[1], [0], [0], [1], [0, 0, 1, 1], [], []>} : vector<256x12xbf16>, vector<12x128xbf16>, vector<256x128xf32> -> vector<256x128xf32>
    %18 = arith.addf %9, %17 : vector<256x128xf32>
    %c2_i32 = arith.constant 2 : i32
    %19 = arith.addi %1, %c2_i32 : i32
    %c0_11 = arith.constant 0 : index
    %20 = arith.index_cast %19 : i32 to index
    %c0_12 = arith.constant 0 : index
    %c0_13 = arith.constant 0 : index
    %21 = vector.load %arg2[%c0_11, %20, %c0_12, %c0_13] : memref<1x18x16x12xbf16, #tpu.memory_space<vmem>>, vector<1x16x16x12xbf16>
    %22 = vector.shape_cast %21 : vector<1x16x16x12xbf16> to vector<16x16x12xbf16>
    %23 = vector.shape_cast %22 : vector<16x16x12xbf16> to vector<256x12xbf16>
    %c2 = arith.constant 2 : index
    %c0_14 = arith.constant 0 : index
    %c0_15 = arith.constant 0 : index
    %24 = vector.load %arg3[%c2, %c0_14, %c0_15] : memref<3x12x128xbf16, #tpu.memory_space<vmem>>, vector<1x12x128xbf16>
    %25 = vector.shape_cast %24 : vector<1x12x128xbf16> to vector<12x128xbf16>
    %cst_16 = arith.constant dense<0.000000e+00> : vector<256x128xf32>
    %26 = tpu.matmul %23, %25, %cst_16 {dimension_numbers = #tpu.dot_dimension_numbers<[1], [0], [0], [1], [0, 0, 1, 1], [], []>} : vector<256x12xbf16>, vector<12x128xbf16>, vector<256x128xf32> -> vector<256x128xf32>
    %27 = arith.addf %18, %26 : vector<256x128xf32>
    %c0_17 = arith.constant 0 : index
    %c0_18 = arith.constant 0 : index
    %28 = vector.load %arg4[%c0_17, %c0_18] : memref<1x128xf32, #tpu.memory_space<vmem>>, vector<1x128xf32>
    %29 = vector.broadcast %28 : vector<1x128xf32> to vector<256x128xf32>
    %30 = arith.addf %27, %29 : vector<256x128xf32>
    %31 = vector.shape_cast %30 : vector<256x128xf32> to vector<16x16x128xf32>
    %c0_19 = arith.constant 0 : index
    %c0_20 = arith.constant 0 : index
    %c0_21 = arith.constant 0 : index
    %c0_22 = arith.constant 0 : index
    %32 = vector.load %arg5[%c0_19, %c0_20, %c0_21, %c0_22] : memref<1x16x16x128xf32, #tpu.memory_space<vmem>>, vector<1x16x16x128xf32>
    %33 = vector.shape_cast %32 : vector<1x16x16x128xf32> to vector<16x16x128xf32>
    %34 = vector.shape_cast %31 : vector<16x16x128xf32> to vector<1x16x16x128xf32>
    tpu.vector_store %arg5[%c0_19, %c0_20, %c0_21, %c0_22], %34 {strides = array<i32>} : memref<1x16x16x128xf32, #tpu.memory_space<vmem>>, vector<1x16x16x128xf32>,
    return
  }
  func.func @transform_0(%arg0: i32, %arg1: i32) -> (i32, i32, i32, i32) {
    %c0_i32 = arith.constant 0 : i32
    %c0_i32_0 = arith.constant 0 : i32
    %c0_i32_1 = arith.constant 0 : i32
    %c0_i32_2 = arith.constant 0 : i32
    return %arg0, %c0_i32, %c0_i32_0, %c0_i32_1 : i32, i32, i32, i32
  }
  func.func @transform_1(%arg0: i32, %arg1: i32) -> (i32, i32, i32) {
    %c0_i32 = arith.constant 0 : i32
    %c0_i32_0 = arith.constant 0 : i32
    %c0_i32_1 = arith.constant 0 : i32
    %c0_i32_2 = arith.constant 0 : i32
    return %c0_i32, %c0_i32_0, %c0_i32_1 : i32, i32, i32
  }
  func.func @transform_2(%arg0: i32, %arg1: i32) -> (i32, i32) {
    %c0_i32 = arith.constant 0 : i32
    %c0_i32_0 = arith.constant 0 : i32
    %c0_i32_1 = arith.constant 0 : i32
    return %c0_i32, %c0_i32_0 : i32, i32
  }
  func.func @transform_3(%arg0: i32, %arg1: i32) -> (i32, i32, i32, i32) {
    %c0_i32 = arith.constant 0 : i32
    %c0_i32_0 = arith.constant 0 : i32
    %c0_i32_1 = arith.constant 0 : i32
    return %arg0, %arg1, %c0_i32, %c0_i32_0 : i32, i32, i32, i32
  }
}

</mosaic_0001>

<bundles_post_ra>
// kernel: tpu_custom_call.1
= control target key start
LH: loop header
LB: loop body
LE: loop exit
PB: predicated region body
PF: predicated region fallthrough
CT: control target
= control target key end

     0   :  { %8 = vsyncpa [#allocation3], 0  ;;  %s2318_s0 = inlined_call_operand.vmem [shape: bf16[2,18,16,12], index: 0, kind: input, shape index: {}]   ;;  %s2319_s1 = inlined_call_operand.vmem [shape: bf16[3,12,128], index: 1, kind: input, shape index: {}]   ;;  %s2320_s2 = inlined_call_operand.vmem [shape: f32[1,128], index: 2, kind: input, shape index: {}]   ;;  %s2321_s3 = inlined_call_operand.hbm [shape: f32[2,16,16,128], index: 3, kind: output, shape index: {}]  }
   0x1   :  { %10 = vsyncpa [#allocation3 + $0x1], 0  ;;  %s2013_s12 = smov 0   ;;  %s2015_s13 = smov 0  }
   0x2   :  { %s2017_s14 = smov 0   ;;  %s2019_s15 = smov 0  }
   0x3   :  { %s2021_s16 = smov 0   ;;  %s2023_s17 = smov 0  }
   0x4 LB: > { %s1397_s18 = sadd.s32 4294967295, %s1988_s17   ;;  %s1398_s19 = sadd.s32 4294967294, %s1988_s17   ;;  %s1988_s17 = sphi %s2023_s17, %s16_s17   ;;  %s1984_s16 = sphi %s2021_s16, %s2328_s16   ;;  %s1980_s15 = sphi %s2019_s15, %s2327_s15   ;;  %s1976_s14 = sphi %s2017_s14, %s2326_s14   ;;  %s1972_s13 = sphi %s2015_s13, %s2325_s13   ;;  %s1968_s12 = sphi %s2013_s12, %s2324_s12  }
   0x5   : > { %s28_s20 = sadd.s32 1, %s1984_s16  ;;  %s105_s21 = sadd.s32 1, %s1976_s14 }
   0x6   : > { %p30_p0 = scmp.ge.s32.totalorder %s28_s20, 2  ;;  %p115_p1 = scmp.ne.s32.totalorder %s1976_s14, %s1972_s13 }
   0x7   : > { %p116_p2 = scmp.eq.s32.totalorder %s1397_s18, 1  ;;  %p121_p3 = scmp.ne.s32.totalorder %s1972_s13, %s1968_s12 }
   0x8   : > { %s2330_s20 = smov (%p30_p0, %s28_s20), 0  ;;  %p122_p5 = scmp.eq.s32.totalorder %s1398_s19, 1 }
   0x9   : > { %p2053_p4 = por %p116_p2, %p115_p1  ;;  %s100_s23 = ssub.s32 %s1984_s16, %s2330_s20 }
   0xa   : > { %p1401_p6 = scmp.ge.s32.totalorder %s1988_s17, 1  ;;  %p103_p7 = scmp.eq.s32.totalorder %s100_s23, 0 }
   0xb   : > { %p2060_p8 = por %p122_p5, %p121_p3  ;;  %p154_p9 = scmp.lt.s32.totalorder %s1988_s17, 3 }
   0xc   : > { %s2066_s25 = scalar_select %p103_p7, %s1976_s14, %s105_s21  }
   0xd   : > { %p155_p10 = pnand %p1401_p6, %p154_p9 }
   0xe   : > { %v1859_v0 = vld [vmem:[%s2319_s1 + $0x8] sm:$0x3f] (!%p155_p10)   ;;  %vm396_vm0 = vcmask (!%p155_p10), 1045504   ;;  %p178_p11 = scmp.lt.s32.totalorder (!%p155_p10), %s1980_s15, 1  ;;  %v1860_v1 = vld [vmem:[%s2319_s1] sm:$0x3f] (!%p155_p10)  }
   0xf   : > { %158 = sbr.rel (%p155_p10) target bundleno = 351 (0x15f), region = 32  ;;  %1797 = vmatprep.subr.msk.bf16.mxu1 (!%p155_p10), %vm396_vm0, %v1859_v0  ;;  %v398_v2 = vsel (!%p155_p10), %vm396_vm0, %v1859_v0, 0  ;;  %v1863_v3 = vld [vmem:[%s2319_s1 + $0x10] sm:$0x3f] (!%p155_p10)   ;;  %1798 = vmatprep.subr.msk.bf16.mxu0 (!%p155_p10), %vm396_vm0, %v1860_v1  ;;  %v695_v4 = vsel (!%p155_p10), %vm396_vm0, %v1860_v1, 0  ;;  %vm347_vm1 = vcmask (!%p155_p10), 97280  }
  0x10   : > { %1630 = vmatpush3.bf16.msra.mxu1 (!%p155_p10), %v398_v2  ;;  %1664 = vmatpush3.bf16.msra.mxu0 (!%p155_p10), %v695_v4  ;;  %v1031_v9 = vsel (!%p155_p10), %vm396_vm0, %v1863_v3, 0  ;;  %s175_s10 = sand.u32 (!%p155_p10), 1, %s1972_s13   ;;  %s1577_s23 = sshll.u32 (!%p155_p10), %s1980_s15, 12 }
  0x11   : > { %1799 = vmatprep.subr.msk.bf16.mxu1 (!%p155_p10), %vm396_vm0, %v1860_v1  ;;  %1800 = vmatprep.subr.msk.bf16.mxu0 (!%p155_p10), %vm396_vm0, %v1863_v3  ;;  %s1402_s11 = sshll.u32 (!%p155_p10), %s175_s10, 8  ;;  %s2262_s29 = scalar_lea.hbm (!%p155_p10), %s2321_s3, %s1577_s23 }
  0x12   : > { %s2197_s21 = scalar_lea.vmem (!%p155_p10), [#allocation2], %s1402_s11  ;;  %s1990_s4 = smov (!%p155_p10), [#allocation2]  }
  0x13   : > { %s1314_s26 = sshll.u32 (!%p155_p10), %s2197_s21, 4  ;;  %s1914_s5 = sshll.u32 (!%p155_p10), %s1990_s4, 4  ;;  %s2264_s26 = int_to_ptr.vmem [resolvable:$true] %s1314_s26  ;;  %s1915_s5 = int_to_ptr.vmem [resolvable:$false] %s1914_s5 }
  0x14   : > { %p1917_p1 = scmp.lt.s32.totalorder (!%p155_p10), %s2264_s26, %s1915_s5 }
  0x16   : > { %s179_s30 = scalar_select %p178_p11, %s1980_s15, 1 }
  0x17   : > { %s2272_s15 = scalar_lea.sflag [#allocation3], %s175_s10 }
  0x18   : > { %s1801_s6 = smul.u32 144, %s179_s30  ;;  %s1910_s30 = scalar_lea.vmem %s2264_s26, 4096 }
  0x19   : > { %p1911_p12 = scmp.ne.s32.totalorder %s2264_s26, %s1910_s30 }
  0x1a   : > { %s2088_s9 = scalar_lea.vmem %s2318_s0, %s1801_s6  ;;  %s1916_s6 = scalar_lea.vmem %s1915_s5, 8192 }
  0x1b   : > { %v1861_v5 = vld [vmem:[%s2088_s9 + $0x8] sm:$0xff]   ;;  %v1862_v6 = vld [vmem:[%s2088_s9] sm:$0xff]   ;;  %v1864_v7 = vld [vmem:[%s2088_s9 + $0x10] sm:$0xff]   ;;  %p1912_p13 = pnand %p1911_p12, %p2053_p4  ;;  %p1918_p2 = scmp.lt.s32.totalorder %s1916_s6, %s1910_s30 }
  0x1c   : > { %1631 = vmatprep.mubr.msk.bf16.mxu1 %vm347_vm1, %v1861_v5  ;;  %1665 = vmatprep.mubr.msk.bf16.mxu0 %vm347_vm1, %v1862_v6  ;;  %v1865_v8 = vld [vmem:[%s2088_s9 + $0x8] sm:$0xff]   ;;  %v1866_v10 = vld [vmem:[%s2088_s9 + $0x18] sm:$0xff]   ;;  %v1867_v11 = vld [vmem:[%s2088_s9 + $0x10] sm:$0xff]  }
  0x1d   : > { %1632 = vmatmul.mubr.msk.bf16.vlgmr.msra.gmra.mrb[0].mxu1 %vm347_vm1, %v1864_v7  ;;  %1666 = vmatmul.mubr.msk.bf16.vlgmr.msra.gmra.mrb[0].mxu0 %vm347_vm1, %v1865_v8  ;;  %v1868_v12 = vld [vmem:[%s2088_s9 + $0x20] sm:$0xff]   ;;  %v1869_v13 = vld [vmem:[%s2088_s9 + $0x18] sm:$0xff]   ;;  %v1870_v14 = vld [vmem:[%s2088_s9 + $0x28] sm:$0xff]   ;;  %p1913_p0 = pneg %p1912_p13  ;;  %p1919_p3 = por %p1918_p2, %p1917_p1 }
  0x1e   : > { %1732 = vmatpush3.bf16.msra.mxu1 %v695_v4  ;;  %1698 = vmatpush3.bf16.msra.mxu0 %v1031_v9  ;;  %v1871_v15 = vld [vmem:[%s2088_s9 + $0x20] sm:$0xff]   ;;  %v1872_v16 = vld [vmem:[%s2088_s9 + $0x30] sm:$0xff]   ;;  %v1873_v17 = vld [vmem:[%s2088_s9 + $0x28] sm:$0xff]  }
  0x1f   : > { %1635 = vmatprep.mubr.msk.bf16.mxu1 %vm347_vm1, %v1866_v10  ;;  %1669 = vmatprep.mubr.msk.bf16.mxu0 %vm347_vm1, %v1867_v11  ;;  %v1874_v18 = vld [vmem:[%s2088_s9 + $0x38] sm:$0xff]   ;;  %v1875_v19 = vld [vmem:[%s2088_s9 + $0x30] sm:$0xff]   ;;  %v1876_v20 = vld [vmem:[%s2088_s9 + $0x40] sm:$0xff]   ;;  %p1920_p5 = pnand %p1919_p3, %p1913_p0 }
  0x20   : > { %v1877_v21 = vld [vmem:[%s2088_s9 + $0x38] sm:$0xff]   ;;  %v1878_v22 = vld [vmem:[%s2088_s9 + $0x48] sm:$0xff]   ;;  %v1879_v23 = vld [vmem:[%s2088_s9 + $0x10] sm:$0xff]  }
  0x21   : > { %v1880_v24 = vld [vmem:[%s2088_s9 + $0x50] sm:$0xff]   ;;  %v1881_v25 = vld [vmem:[%s2088_s9 + $0x18] sm:$0xff]   ;;  %v1883_v27 = vld [vmem:[%s2088_s9 + $0x20] sm:$0xff]  }
  0x22   : > { %v1882_v26 = vld [vmem:[%s2088_s9 + $0x58] sm:$0xff]   ;;  %v1884_v28 = vld [vmem:[%s2088_s9 + $0x60] sm:$0xff]   ;;  %v1885_v29 = vld [vmem:[%s2088_s9 + $0x28] sm:$0xff]  }
  0x23   : > { %v1886_v30 = vld [vmem:[%s2088_s9 + $0x68] sm:$0xff]   ;;  %v1887_v31 = vld [vmem:[%s2088_s9 + $0x30] sm:$0xff]   ;;  %v1889_v33 = vld [vmem:[%s2088_s9 + $0x38] sm:$0xff]  }
  0x24   : > { %v1888_v32 = vld [vmem:[%s2088_s9 + $0x70] sm:$0xff]   ;;  %v1890_v34 = vld [vmem:[%s2088_s9 + $0x78] sm:$0xff]   ;;  %v1891_v35 = vld [vmem:[%s2088_s9 + $0x40] sm:$0xff]  }
  0x25   : > { %1636 = vmatmul.mubr.msk.bf16.gmra.mrb[4].mxu1 %vm347_vm1, %v1868_v12  ;;  %1670 = vmatmul.mubr.msk.bf16.gmra.mrb[4].mxu0 %vm347_vm1, %v1869_v13  ;;  %v1892_v36 = vld [vmem:[%s2088_s9 + $0x80] sm:$0xff]   ;;  %v1893_v37 = vld [vmem:[%s2088_s9 + $0x48] sm:$0xff]   ;;  %v1895_v39 = vld [vmem:[%s2088_s9 + $0x50] sm:$0xff]  }
  0x26   : > { %1639 = vmatprep.mubr.msk.bf16.mxu1 %vm347_vm1, %v1870_v14  ;;  %1673 = vmatprep.mubr.msk.bf16.mxu0 %vm347_vm1, %v1871_v15  ;;  %v1894_v38 = vld [vmem:[%s2088_s9 + $0x40] sm:$0xff]   ;;  %v1896_v40 = vld [vmem:[%s2088_s9 + $0x48] sm:$0xff]   ;;  %v1897_v41 = vld [vmem:[%s2088_s9 + $0x58] sm:$0xff]  }
  0x27   : > { %v1898_v42 = vld [vmem:[%s2088_s9 + $0x50] sm:$0xff]   ;;  %v1899_v43 = vld [vmem:[%s2088_s9 + $0x60] sm:$0xff]   ;;  %v1900_v44 = vld [vmem:[%s2088_s9 + $0x58] sm:$0xff]  }
  0x28   : > { %v1901_v45 = vld [vmem:[%s2088_s9 + $0x68] sm:$0xff]   ;;  %v1902_v46 = vld [vmem:[%s2088_s9 + $0x60] sm:$0xff]   ;;  %v1903_v47 = vld [vmem:[%s2088_s9 + $0x70] sm:$0xff]  }
  0x29   : > { %v1904_v48 = vld [vmem:[%s2088_s9 + $0x68] sm:$0xff]   ;;  %v1905_v49 = vld [vmem:[%s2088_s9 + $0x78] sm:$0xff]   ;;  %v1906_v50 = vld [vmem:[%s2088_s9 + $0x70] sm:$0xff]  }
  0x2a   : > { %v1907_v51 = vld [vmem:[%s2088_s9 + $0x80] sm:$0xff]   ;;  %v1908_v52 = vld [vmem:[%s2088_s9 + $0x78] sm:$0xff]   ;;  %v1909_v53 = vld [vmem:[%s2088_s9 + $0x88] sm:$0xff]  }
  0x2b   : > { %v2193_v7 = vld [vmem:[%s2320_s2] ss:$0 sm:$0xff] }
  0x2d   : > { %1640 = vmatmul.mubr.msk.bf16.gmra.mrb[8].mxu1 %vm347_vm1, %v1872_v16  ;;  %1674 = vmatmul.mubr.msk.bf16.gmra.mrb[8].mxu0 %vm347_vm1, %v1873_v17 }
  0x2e   : > { %1643 = vmatprep.mubr.msk.bf16.mxu1 %vm347_vm1, %v1874_v18  ;;  %1677 = vmatprep.mubr.msk.bf16.mxu0 %vm347_vm1, %v1875_v19 }
  0x35   : > { %1644 = vmatmul.mubr.msk.bf16.gmra.mrb[12].mxu1 %vm347_vm1, %v1876_v20  ;;  %1678 = vmatmul.mubr.msk.bf16.gmra.mrb[12].mxu0 %vm347_vm1, %v1877_v21 }
  0x36   : > { %1647 = vmatprep.mubr.msk.bf16.mxu1 %vm347_vm1, %v1878_v22  ;;  %1699 = vmatprep.mubr.msk.bf16.mxu0 %vm347_vm1, %v1879_v23 }
  0x3d   : > { %1648 = vmatmul.mubr.msk.bf16.gmra.mrb[16].mxu1 %vm347_vm1, %v1880_v24  ;;  %1700 = vmatmul.mubr.msk.bf16.vlgmr.msra.gmra.mrb[0].mxu0 %vm347_vm1, %v1881_v25 }
  0x3e   : > { %1651 = vmatprep.mubr.msk.bf16.mxu1 %vm347_vm1, %v1882_v26  ;;  %1703 = vmatprep.mubr.msk.bf16.mxu0 %vm347_vm1, %v1883_v27 }
  0x45   : > { %1652 = vmatmul.mubr.msk.bf16.gmra.mrb[20].mxu1 %vm347_vm1, %v1884_v28  ;;  %1704 = vmatmul.mubr.msk.bf16.gmra.mrb[4].mxu0 %vm347_vm1, %v1885_v29 }
  0x46   : > { %1655 = vmatprep.mubr.msk.bf16.mxu1 %vm347_vm1, %v1886_v30  ;;  %1707 = vmatprep.mubr.msk.bf16.mxu0 %vm347_vm1, %v1887_v31 }
  0x4d   : > { %1656 = vmatmul.mubr.msk.bf16.gmra.mrb[24].mxu1 %vm347_vm1, %v1888_v32  ;;  %1708 = vmatmul.mubr.msk.bf16.gmra.mrb[8].mxu0 %vm347_vm1, %v1889_v33 }
  0x4e   : > { %1659 = vmatprep.mubr.msk.bf16.mxu1 %vm347_vm1, %v1890_v34  ;;  %1711 = vmatprep.mubr.msk.bf16.mxu0 %vm347_vm1, %v1891_v35 }
  0x55   : > { %1660 = vmatmul.mubr.msk.bf16.gmra.mrb[28].mxu1 %vm347_vm1, %v1892_v36  ;;  %1712 = vmatmul.mubr.msk.bf16.gmra.mrb[12].mxu0 %vm347_vm1, %v1893_v37 }
  0x56   : > { %1681 = vmatprep.mubr.msk.bf16.mxu1 %vm347_vm1, %v1894_v38  ;;  %1715 = vmatprep.mubr.msk.bf16.mxu0 %vm347_vm1, %v1895_v39 }
  0x5d   : > { %1682 = vmatmul.mubr.msk.bf16.vlgmr.msra.gmra.mrb[16].mxu1 %vm347_vm1, %v1896_v40  ;;  %1716 = vmatmul.mubr.msk.bf16.gmra.mrb[16].mxu0 %vm347_vm1, %v1897_v41 }
  0x5e   : > { %1685 = vmatprep.mubr.msk.bf16.mxu1 %vm347_vm1, %v1898_v42  ;;  %1719 = vmatprep.mubr.msk.bf16.mxu0 %vm347_vm1, %v1899_v43 }
  0x65   : > { %1686 = vmatmul.mubr.msk.bf16.gmra.mrb[20].mxu1 %vm347_vm1, %v1900_v44  ;;  %1720 = vmatmul.mubr.msk.bf16.gmra.mrb[20].mxu0 %vm347_vm1, %v1901_v45 }
  0x66   : > { %1689 = vmatprep.mubr.msk.bf16.mxu1 %vm347_vm1, %v1902_v46  ;;  %1723 = vmatprep.mubr.msk.bf16.mxu0 %vm347_vm1, %v1903_v47 }
  0x6d   : > { %1690 = vmatmul.mubr.msk.bf16.gmra.mrb[24].mxu1 %vm347_vm1, %v1904_v48  ;;  %1724 = vmatmul.mubr.msk.bf16.gmra.mrb[24].mxu0 %vm347_vm1, %v1905_v49 }
  0x6e   : > { %1693 = vmatprep.mubr.msk.bf16.mxu1 %vm347_vm1, %v1906_v50  ;;  %1727 = vmatprep.mubr.msk.bf16.mxu0 %vm347_vm1, %v1907_v51 }
  0x75   : > { %1694 = vmatmul.mubr.msk.bf16.gmra.mrb[28].mxu1 %vm347_vm1, %v1908_v52  ;;  %1728 = vmatmul.mubr.msk.bf16.gmra.mrb[28].mxu0 %vm347_vm1, %v1909_v53 }
  0xf0   : > { %v1633_v54 = vpop.f32.mrb[0].mxu1 }
  0xf1   : > { %v434_v55 = vpop.f32.mrb[1].mxu1 }
  0xf2   : > { %v1634_v56 = vpop.f32.mrb[2].mxu1 }
  0xf3   : > { %v437_v57 = vpop.f32.mrb[3].mxu1 }
  0xf8   : > { %v1637_v58 = vpop.f32.mrb[4].mxu1 }
  0xf9   : > { %v450_v59 = vpop.f32.mrb[5].mxu1 }
  0xfa   : > { %v1638_v60 = vpop.f32.mrb[6].mxu1 }
  0xfb   : > { %v453_v61 = vpop.f32.mrb[7].mxu1 }
 0x100   : > { %v1641_v62 = vpop.f32.mrb[8].mxu1 }
 0x101   : > { %v466_v63 = vpop.f32.mrb[9].mxu1 }
 0x102   : > { %v1642_v0 = vpop.f32.mrb[10].mxu1 }
 0x103   : > { %v469_v1 = vpop.f32.mrb[11].mxu1 }
 0x108   : > { %v1645_v2 = vpop.f32.mrb[12].mxu1 }
 0x109   : > { %v482_v3 = vpop.f32.mrb[13].mxu1 }
 0x10a   : > { %v1646_v4 = vpop.f32.mrb[14].mxu1 }
 0x10b   : > { %v485_v5 = vpop.f32.mrb[15].mxu1 }
 0x110   : > { %v1701_v6 = vpop.f32.mrb[0].mxu0 }
 0x111   : > { %v1733_v8 = vadd.f32 %v1701_v6, %v1633_v54  ;;  %v1067_v9 = vpop.f32.mrb[1].mxu0 }
 0x112   : > { %v1734_v10 = vadd.f32 %v1067_v9, %v434_v55  ;;  %v1702_v11 = vpop.f32.mrb[2].mxu0 }
 0x113   : > { %v1235_v12 = vadd.f32 %v1733_v8, %v2193_v7  ;;  %v1735_v13 = vadd.f32 %v1702_v11, %v1634_v56  ;;  %v1070_v14 = vpop.f32.mrb[3].mxu0 }
 0x114   : > { %v1233_v15 = vadd.f32 %v1734_v10, %v2193_v7  ;;  %v1736_v16 = vadd.f32 %v1070_v14, %v437_v57 }
 0x115   : > { %1267 = vst [vmem:[%s2197_s21 + $0x10] sm:$0xff] %v1235_v12  ;;  %v1236_v17 = vadd.f32 %v1735_v13, %v2193_v7 }
 0x116   : > { %1265 = vst [vmem:[%s2197_s21] sm:$0xff] %v1233_v15  ;;  %v1234_v18 = vadd.f32 %v1736_v16, %v2193_v7 }
 0x117   : > { %1268 = vst [vmem:[%s2197_s21 + $0x18] sm:$0xff] %v1236_v17 }
 0x118   : > { %1266 = vst [vmem:[%s2197_s21 + $0x8] sm:$0xff] %v1234_v18  ;;  %v1705_v19 = vpop.f32.mrb[4].mxu0 }
 0x119   : > { %v1737_v20 = vadd.f32 %v1705_v19, %v1637_v58  ;;  %v1083_v21 = vpop.f32.mrb[5].mxu0 }
 0x11a   : > { %v1738_v22 = vadd.f32 %v1083_v21, %v450_v59  ;;  %v1706_v23 = vpop.f32.mrb[6].mxu0 }
 0x11b   : > { %v1239_v24 = vadd.f32 %v1737_v20, %v2193_v7  ;;  %v1739_v25 = vadd.f32 %v1706_v23, %v1638_v60  ;;  %v1086_v26 = vpop.f32.mrb[7].mxu0 }
 0x11c   : > { %v1237_v27 = vadd.f32 %v1738_v22, %v2193_v7  ;;  %v1740_v28 = vadd.f32 %v1086_v26, %v453_v61 }
 0x11d   : > { %1271 = vst [vmem:[%s2197_s21 + $0x30] sm:$0xff] %v1239_v24  ;;  %v1240_v29 = vadd.f32 %v1739_v25, %v2193_v7 }
 0x11e   : > { %1269 = vst [vmem:[%s2197_s21 + $0x20] sm:$0xff] %v1237_v27  ;;  %v1238_v30 = vadd.f32 %v1740_v28, %v2193_v7 }
 0x11f   : > { %1272 = vst [vmem:[%s2197_s21 + $0x38] sm:$0xff] %v1240_v29 }
 0x120   : > { %1270 = vst [vmem:[%s2197_s21 + $0x28] sm:$0xff] %v1238_v30  ;;  %v1709_v31 = vpop.f32.mrb[8].mxu0 }
 0x121   : > { %v1741_v32 = vadd.f32 %v1709_v31, %v1641_v62  ;;  %v1099_v33 = vpop.f32.mrb[9].mxu0 }
 0x122   : > { %v1742_v34 = vadd.f32 %v1099_v33, %v466_v63  ;;  %v1710_v35 = vpop.f32.mrb[10].mxu0 }
 0x123   : > { %v1243_v36 = vadd.f32 %v1741_v32, %v2193_v7  ;;  %v1743_v37 = vadd.f32 %v1710_v35, %v1642_v0  ;;  %v1102_v38 = vpop.f32.mrb[11].mxu0 }
 0x124   : > { %v1241_v39 = vadd.f32 %v1742_v34, %v2193_v7  ;;  %v1744_v40 = vadd.f32 %v1102_v38, %v469_v1 }
 0x125   : > { %1275 = vst [vmem:[%s2197_s21 + $0x50] sm:$0xff] %v1243_v36  ;;  %v1244_v41 = vadd.f32 %v1743_v37, %v2193_v7 }
 0x126   : > { %1273 = vst [vmem:[%s2197_s21 + $0x40] sm:$0xff] %v1241_v39  ;;  %v1242_v42 = vadd.f32 %v1744_v40, %v2193_v7 }
 0x127   : > { %1276 = vst [vmem:[%s2197_s21 + $0x58] sm:$0xff] %v1244_v41 }
 0x128   : > { %1274 = vst [vmem:[%s2197_s21 + $0x48] sm:$0xff] %v1242_v42  ;;  %v1713_v43 = vpop.f32.mrb[12].mxu0 }
 0x129   : > { %v1745_v44 = vadd.f32 %v1713_v43, %v1645_v2  ;;  %v1115_v45 = vpop.f32.mrb[13].mxu0 }
 0x12a   : > { %v1746_v46 = vadd.f32 %v1115_v45, %v482_v3  ;;  %v1714_v47 = vpop.f32.mrb[14].mxu0 }
 0x12b   : > { %v1247_v48 = vadd.f32 %v1745_v44, %v2193_v7  ;;  %v1747_v49 = vadd.f32 %v1714_v47, %v1646_v4  ;;  %v1118_v50 = vpop.f32.mrb[15].mxu0 }
 0x12c   : > { %v1245_v51 = vadd.f32 %v1746_v46, %v2193_v7  ;;  %v1748_v52 = vadd.f32 %v1118_v50, %v485_v5 }
 0x12d   : > { %1279 = vst [vmem:[%s2197_s21 + $0x70] sm:$0xff] %v1247_v48  ;;  %v1248_v53 = vadd.f32 %v1747_v49, %v2193_v7 }
 0x12e   : > { %1277 = vst [vmem:[%s2197_s21 + $0x60] sm:$0xff] %v1245_v51  ;;  %v1246_v54 = vadd.f32 %v1748_v52, %v2193_v7 }
 0x12f   : > { %1280 = vst [vmem:[%s2197_s21 + $0x78] sm:$0xff] %v1248_v53 }
 0x130   : > { %v1683_v55 = vpop.f32.mrb[16].mxu1  ;;  %1278 = vst [vmem:[%s2197_s21 + $0x68] sm:$0xff] %v1246_v54  ;;  %v1717_v56 = vpop.f32.mrb[16].mxu0 }
 0x131   : > { %v795_v57 = vpop.f32.mrb[17].mxu1  ;;  %v1749_v58 = vadd.f32 %v1717_v56, %v1683_v55  ;;  %v1131_v59 = vpop.f32.mrb[17].mxu0 }
 0x132   : > { %v1684_v60 = vpop.f32.mrb[18].mxu1  ;;  %v1750_v61 = vadd.f32 %v1131_v59, %v795_v57  ;;  %v1718_v62 = vpop.f32.mrb[18].mxu0 }
 0x133   : > { %v798_v63 = vpop.f32.mrb[19].mxu1  ;;  %v1251_v0 = vadd.f32 %v1749_v58, %v2193_v7  ;;  %v1751_v1 = vadd.f32 %v1718_v62, %v1684_v60  ;;  %v1134_v2 = vpop.f32.mrb[19].mxu0 }
 0x134   : > { %v1249_v3 = vadd.f32 %v1750_v61, %v2193_v7  ;;  %v1752_v4 = vadd.f32 %v1134_v2, %v798_v63 }
 0x135   : > { %1283 = vst [vmem:[%s2197_s21 + $0x90] sm:$0xff] %v1251_v0  ;;  %v1252_v5 = vadd.f32 %v1751_v1, %v2193_v7 }
 0x136   : > { %1281 = vst [vmem:[%s2197_s21 + $0x80] sm:$0xff] %v1249_v3  ;;  %v1250_v6 = vadd.f32 %v1752_v4, %v2193_v7 }
 0x137   : > { %1284 = vst [vmem:[%s2197_s21 + $0x98] sm:$0xff] %v1252_v5 }
 0x138   : > { %v1687_v8 = vpop.f32.mrb[20].mxu1  ;;  %1282 = vst [vmem:[%s2197_s21 + $0x88] sm:$0xff] %v1250_v6  ;;  %v1721_v9 = vpop.f32.mrb[20].mxu0 }
 0x139   : > { %v811_v10 = vpop.f32.mrb[21].mxu1  ;;  %v1753_v11 = vadd.f32 %v1721_v9, %v1687_v8  ;;  %v1147_v12 = vpop.f32.mrb[21].mxu0 }
 0x13a   : > { %v1688_v13 = vpop.f32.mrb[22].mxu1  ;;  %v1754_v14 = vadd.f32 %v1147_v12, %v811_v10  ;;  %v1722_v15 = vpop.f32.mrb[22].mxu0 }
 0x13b   : > { %v814_v16 = vpop.f32.mrb[23].mxu1  ;;  %v1255_v17 = vadd.f32 %v1753_v11, %v2193_v7  ;;  %v1755_v18 = vadd.f32 %v1722_v15, %v1688_v13  ;;  %v1150_v19 = vpop.f32.mrb[23].mxu0 }
 0x13c   : > { %v1253_v20 = vadd.f32 %v1754_v14, %v2193_v7  ;;  %v1756_v21 = vadd.f32 %v1150_v19, %v814_v16 }
 0x13d   : > { %1287 = vst [vmem:[%s2197_s21 + $0xb0] sm:$0xff] %v1255_v17  ;;  %v1256_v22 = vadd.f32 %v1755_v18, %v2193_v7 }
 0x13e   : > { %1285 = vst [vmem:[%s2197_s21 + $0xa0] sm:$0xff] %v1253_v20  ;;  %v1254_v23 = vadd.f32 %v1756_v21, %v2193_v7 }
 0x13f   : > { %1288 = vst [vmem:[%s2197_s21 + $0xb8] sm:$0xff] %v1256_v22 }
 0x140   : > { %v1691_v24 = vpop.f32.mrb[24].mxu1  ;;  %1286 = vst [vmem:[%s2197_s21 + $0xa8] sm:$0xff] %v1254_v23  ;;  %v1725_v25 = vpop.f32.mrb[24].mxu0 }
 0x141   : > { %v827_v26 = vpop.f32.mrb[25].mxu1  ;;  %v1757_v27 = vadd.f32 %v1725_v25, %v1691_v24  ;;  %v1163_v28 = vpop.f32.mrb[25].mxu0 }
 0x142   : > { %v1692_v29 = vpop.f32.mrb[26].mxu1  ;;  %v1758_v30 = vadd.f32 %v1163_v28, %v827_v26  ;;  %v1726_v31 = vpop.f32.mrb[26].mxu0 }
 0x143   : > { %v830_v32 = vpop.f32.mrb[27].mxu1  ;;  %v1259_v33 = vadd.f32 %v1757_v27, %v2193_v7  ;;  %v1759_v34 = vadd.f32 %v1726_v31, %v1692_v29  ;;  %v1166_v35 = vpop.f32.mrb[27].mxu0 }
 0x144   : > { %v1257_v36 = vadd.f32 %v1758_v30, %v2193_v7  ;;  %v1760_v37 = vadd.f32 %v1166_v35, %v830_v32 }
 0x145   : > { %1291 = vst [vmem:[%s2197_s21 + $0xd0] sm:$0xff] %v1259_v33  ;;  %v1260_v38 = vadd.f32 %v1759_v34, %v2193_v7 }
 0x146   : > { %1289 = vst [vmem:[%s2197_s21 + $0xc0] sm:$0xff] %v1257_v36  ;;  %v1258_v39 = vadd.f32 %v1760_v37, %v2193_v7 }
 0x147   : > { %1292 = vst [vmem:[%s2197_s21 + $0xd8] sm:$0xff] %v1260_v38 }
 0x148   : > { %v1695_v40 = vpop.f32.mrb[28].mxu1  ;;  %1290 = vst [vmem:[%s2197_s21 + $0xc8] sm:$0xff] %v1258_v39  ;;  %v1729_v41 = vpop.f32.mrb[28].mxu0 }
 0x149   : > { %v843_v42 = vpop.f32.mrb[29].mxu1  ;;  %v1761_v43 = vadd.f32 %v1729_v41, %v1695_v40  ;;  %v1179_v44 = vpop.f32.mrb[29].mxu0 }
 0x14a   : > { %v1696_v45 = vpop.f32.mrb[30].mxu1  ;;  %v1762_v46 = vadd.f32 %v1179_v44, %v843_v42  ;;  %v1730_v47 = vpop.f32.mrb[30].mxu0 }
 0x14b   : > { %v846_v48 = vpop.f32.mrb[31].mxu1  ;;  %v1263_v49 = vadd.f32 %v1761_v43, %v2193_v7  ;;  %v1763_v50 = vadd.f32 %v1730_v47, %v1696_v45  ;;  %v1182_v51 = vpop.f32.mrb[31].mxu0 }
 0x14c   : > { %v1261_v52 = vadd.f32 %v1762_v46, %v2193_v7  ;;  %v1764_v53 = vadd.f32 %v1182_v51, %v846_v48 }
 0x14d   : > { %1295 = vst [vmem:[%s2197_s21 + $0xf0] sm:$0xff] %v1263_v49  ;;  %v1264_v54 = vadd.f32 %v1763_v50, %v2193_v7 }
 0x14e   : > { %1293 = vst [vmem:[%s2197_s21 + $0xe0] sm:$0xff] %v1261_v52  ;;  %v1262_v55 = vadd.f32 %v1764_v53, %v2193_v7 }
 0x14f   : > { %1296 = vst [vmem:[%s2197_s21 + $0xf8] sm:$0xff] %v1264_v54 }
 0x150   : > { %1294 = vst [vmem:[%s2197_s21 + $0xe8] sm:$0xff] %v1262_v55 }
 0x151   : > { %1923 = shalt.err (!%p1920_p5)
}
 0x152   : > { %s1924_s7 = scalar_lea.hbm %s2262_s29, 4096  ;;  %s1928_s10 = scalar_lea.hbm %s2321_s3, 8192 }
 0x153   : > { %p1925_p6 = scmp.ne.s32.totalorder %s2262_s29, %s1924_s7  ;;  %p1929_p10 = scmp.lt.u32.totalorder %s2262_s29, %s2321_s3 }
 0x154   : > { %p1930_p11 = scmp.lt.u32.totalorder %s1928_s10, %s1924_s7  ;;  %p1932_p13 = scmp.lt.u32.totalorder %s1924_s7, %s2262_s29 }
 0x155   : > { %p1926_p7 = pnand %p1925_p6, %p2053_p4 }
 0x156   : > { %p1931_p12 = por %p1930_p11, %p1929_p10 }
 0x157   : > { %p1927_p9 = pneg %p1926_p7 }
 0x158   : > { %p1933_p0 = por %p1932_p13, %p1931_p12 }
 0x15a   : > { %p1934_p1 = pnand %p1933_p0, %p1927_p9 }
 0x15c   : > { %1937 = shalt.err (!%p1934_p1)
}
 0x15d   : > { %s1991_s19 = smov 128   ;;  %s1992_s21 = smov 8  }
 0x15e   : > { %1802 = dma.vmem_to_hbm [thread:$0]  (%p2053_p4), %s2264_s26, 4096, %s2262_s29, %s2272_s15, %s1991_s19, %s1991_s19, %s1992_s21  }
 0x15f PF: > { %p1808_p2 = scmp.ge.s32.totalorder %s1988_s17, 2  ;;  %s1329_s23 = sand.u32 1, %s1968_s12  }
 0x160   : > { %s1330_s27 = scalar_lea.sflag [#allocation3], %s1329_s23 }
 0x161   : > { %p1805_p3 = pnand %p1808_p2, %p2060_p8 }
 0x163   : > { %1963 = dma.done.wait (!%p1805_p3), %s1330_s27, 4096  }
 0x164   : > { %1965 = vsyncadd (!%p1805_p3), %s1330_s27, 4294963200  ;;  %s16_s17 = sadd.s32 1, %s1988_s17   ;;  %s2324_s12 = smov %s1972_s13 }
 0x165   : > { %p13_p5 = scmp.ge.s32.totalorder %s16_s17, 4   ;;  %s2325_s13 = smov %s1976_s14 }
 0x166   : > { %s2326_s14 = smov %s2066_s25  ;;  %s2327_s15 = smov %s1984_s16 }
 0x167   : > { %s2328_s16 = smov %s2330_s20  ;;  %15 = sbr.rel (!%p13_p5) target bundleno = 4 (0x4), region = 72 }
 0x16e   :  { %1335 = vsyncpa [#allocation3], 1 }
 0x16f   :  { %1337 = vsyncpa [#allocation3 + $0x1], 1 }

</bundles_post_ra>
